<compile_context>
chip_gen: v7x
topology: tpu7x:2x2x1
jax: 0.10.0
libtpu: 0.0.40
codegen_flags: <defaults>
</compile_context>

<pallas_src>
import jax
import jax.numpy as jnp
from jax.experimental import pallas as pl
from jax.experimental.pallas import tpu as pltpu

# Module hyper-parameters (SlewRateCost(cost, slew_C, n_state, n_ctrl))
N_STATE = 8
N_CTRL = 4
N_TAU = N_STATE + 2 * N_CTRL      # 16
N_TRUE = N_STATE + N_CTRL         # 12
BATCH = 2
T_SLEW = 3                        # leading time axis of slew_C; forward indexes [0]


def _slew_rate_cost_kernel(tau_ref, c_ref, C_ref, out_ref):
    """One fused quadratic form per batch tile, fully in VMEM.

    tau_ref : (TB, N_TAU)
    c_ref   : (TB, N_TAU)          zero-padded linear term (first N_CTRL entries = 0)
    C_ref   : (TB, N_TAU, N_TAU)   slew_C[0] + padded true_C
    out_ref : (1, TB)              lane-dense per-batch cost
    """
    tau = tau_ref[...]                                   # (TB, N_TAU) f32
    c = c_ref[...]                                       # (TB, N_TAU)
    C = C_ref[...]                                       # (TB, N_TAU, N_TAU)

    # matvec then dot: avoids the (TB,16,16) triple-product + 2-axis reduce.
    Cx = jnp.sum(C * tau[:, None, :], axis=-1)           # (TB, N_TAU)
    quad = jnp.sum(tau * Cx, axis=-1)                    # (TB,)
    lin = jnp.sum(c * tau, axis=-1)                      # (TB,)

    out_ref[...] = (0.5 * quad + lin)[None, :]           # (1, TB) lane-dense store


def slew_rate_cost(tau, true_c, true_C, slew_C, *, block_b=512):
    """SlewRateCost.forward: cost(tau[:, n_ctrl:]) + 0.5 * bquad(tau, slew_C[0])."""
    B = tau.shape[0]

    # Fold the inner quadratic cost into the slew quadratic (single 16x16 form):
    #   tau^T C_total tau = tau^T slew_C[0] tau + true_tau^T true_C true_tau
    #   c_total . tau     = true_c . true_tau
    C_total = slew_C[0].at[:, N_CTRL:, N_CTRL:].add(true_C)       # (B, N_TAU, N_TAU)
    c_total = jnp.pad(true_c, ((0, 0), (N_CTRL, 0)))              # (B, N_TAU)

    # Batch tiling: per-row footprint is ~1-2 KB, so block_b=512 double-buffered
    # stays well inside the default scoped VMEM on all of v5e/v6e/v7x.
    tb = min(block_b, B)
    n_blocks = pl.cdiv(B, tb)
    b_pad = n_blocks * tb
    if b_pad != B:
        pad = b_pad - B
        tau = jnp.pad(tau, ((0, pad), (0, 0)))
        c_total = jnp.pad(c_total, ((0, pad), (0, 0)))
        C_total = jnp.pad(C_total, ((0, pad), (0, 0), (0, 0)))

    out = pl.pallas_call(
        _slew_rate_cost_kernel,
        grid=(n_blocks,),
        in_specs=[
            pl.BlockSpec((tb, N_TAU), lambda i: (i, 0)),
            pl.BlockSpec((tb, N_TAU), lambda i: (i, 0)),
            pl.BlockSpec((tb, N_TAU, N_TAU), lambda i: (i, 0, 0)),
        ],
        out_specs=pl.BlockSpec((1, tb), lambda i: (0, i)),
        out_shape=jax.ShapeDtypeStruct((1, b_pad), jnp.float32),
        compiler_params=pltpu.CompilerParams(
            dimension_semantics=("parallel",)),   # 2x on v7x megacore when B is large
    )(tau, c_total, C_total)
    return out[0, :B]


def _reference(tau, true_c, true_C, slew_C):
    """Pure-JAX reference mirroring the PyTorch semantics."""
    true_tau = tau[:, N_CTRL:]
    true_cost = (0.5 * jnp.einsum('bi,bij,bj->b', true_tau, true_C, true_tau)
                 + jnp.einsum('bi,bi->b', true_c, true_tau))
    slew_cost = 0.5 * jnp.einsum('bi,bij,bj->b', tau, slew_C[0], tau)
    return true_cost + slew_cost


if __name__ == "__main__":
    key = jax.random.PRNGKey(0)
    k_tau, k_c, k_C, k_S = jax.random.split(key, 4)

    tau = jax.random.normal(k_tau, (BATCH, N_TAU), dtype=jnp.float32)

    # Deterministic "parameters": symmetric quadratic cost matrices + linear term.
    true_c = jax.random.normal(k_c, (BATCH, N_TRUE), dtype=jnp.float32)
    A = jax.random.normal(k_C, (BATCH, N_TRUE, N_TRUE), dtype=jnp.float32)
    true_C = 0.5 * (A + jnp.swapaxes(A, -1, -2))
    S = jax.random.normal(k_S, (T_SLEW, BATCH, N_TAU, N_TAU), dtype=jnp.float32)
    slew_C = 0.5 * (S + jnp.swapaxes(S, -1, -2))

    out = slew_rate_cost(tau, true_c, true_C, slew_C)
    out = jax.block_until_ready(out)

    ref = _reference(tau, true_c, true_C, slew_C)
    assert out.shape == (BATCH,)
    assert jnp.allclose(out, ref, atol=1e-4, rtol=1e-4), (out, ref)

    # TODO(synk): grad_input raises NotImplementedError in the PyTorch module; not implemented.
    print("KERNEL_OK")
</pallas_src>

<mosaic_0001>
module attributes {stable_mosaic.version = 11 : i64} {
  func.func @_slew_rate_cost_kernel(%arg0: i32, %arg1: memref<2x16xf32, #tpu.memory_space<vmem>>, %arg2: memref<2x16xf32, #tpu.memory_space<vmem>>, %arg3: memref<2x16x16xf32, #tpu.memory_space<vmem>>, %arg4: memref<1x2xf32, #tpu.memory_space<vmem>>) attributes {dimension_semantics = [#tpu.dimension_semantics<parallel>], iteration_bounds = array<i64: 1>, scalar_prefetch = 0 : i64, scratch_operands = 0 : i64, tpu.core_type = #tpu.core_type<tc>, window_params = [{transform_indices = @transform_0, window_bounds = array<i64: 2, 16>}, {transform_indices = @transform_1, window_bounds = array<i64: 2, 16>}, {transform_indices = @transform_2, window_bounds = array<i64: 2, 16, 16>}, {transform_indices = @transform_3, window_bounds = array<i64: 1, 2>}]} {
    %c0 = arith.constant 0 : index
    %c0_0 = arith.constant 0 : index
    %0 = vector.load %arg1[%c0, %c0_0] : memref<2x16xf32, #tpu.memory_space<vmem>>, vector<2x16xf32>
    %c0_1 = arith.constant 0 : index
    %c0_2 = arith.constant 0 : index
    %1 = vector.load %arg2[%c0_1, %c0_2] : memref<2x16xf32, #tpu.memory_space<vmem>>, vector<2x16xf32>
    %c0_3 = arith.constant 0 : index
    %c0_4 = arith.constant 0 : index
    %c0_5 = arith.constant 0 : index
    %2 = vector.load %arg3[%c0_3, %c0_4, %c0_5] : memref<2x16x16xf32, #tpu.memory_space<vmem>>, vector<2x16x16xf32>
    %3 = vector.shape_cast %0 : vector<2x16xf32> to vector<2x1x16xf32>
    %4 = vector.broadcast %3 : vector<2x1x16xf32> to vector<2x16x16xf32>
    %5 = arith.mulf %2, %4 : vector<2x16x16xf32>
    %cst = arith.constant dense<0.000000e+00> : vector<2x16xf32>
    %6 = vector.multi_reduction <add>, %5, %cst [2] : vector<2x16x16xf32> to vector<2x16xf32>
    %7 = arith.mulf %0, %6 : vector<2x16xf32>
    %cst_6 = arith.constant dense<0.000000e+00> : vector<2xf32>
    %8 = vector.multi_reduction <add>, %7, %cst_6 [1] : vector<2x16xf32> to vector<2xf32>
    %9 = arith.mulf %1, %0 : vector<2x16xf32>
    %cst_7 = arith.constant dense<0.000000e+00> : vector<2xf32>
    %10 = vector.multi_reduction <add>, %9, %cst_7 [1] : vector<2x16xf32> to vector<2xf32>
    %cst_8 = arith.constant 5.000000e-01 : f32
    %11 = vector.broadcast %cst_8 : f32 to vector<2xf32>
    %12 = arith.mulf %11, %8 : vector<2xf32>
    %13 = arith.addf %12, %10 : vector<2xf32>
    %14 = vector.shape_cast %13 : vector<2xf32> to vector<1x2xf32>
    %c0_9 = arith.constant 0 : index
    %c0_10 = arith.constant 0 : index
    %15 = vector.load %arg4[%c0_9, %c0_10] : memref<1x2xf32, #tpu.memory_space<vmem>>, vector<1x2xf32>
    tpu.vector_store %arg4[%c0_9, %c0_10], %14 {strides = array<i32>} : memref<1x2xf32, #tpu.memory_space<vmem>>, vector<1x2xf32>,
    return
  }
  func.func @transform_0(%arg0: i32) -> (i32, i32) {
    %c0_i32 = arith.constant 0 : i32
    %c0_i32_0 = arith.constant 0 : i32
    return %arg0, %c0_i32 : i32, i32
  }
  func.func @transform_1(%arg0: i32) -> (i32, i32) {
    %c0_i32 = arith.constant 0 : i32
    %c0_i32_0 = arith.constant 0 : i32
    return %arg0, %c0_i32 : i32, i32
  }
  func.func @transform_2(%arg0: i32) -> (i32, i32, i32) {
    %c0_i32 = arith.constant 0 : i32
    %c0_i32_0 = arith.constant 0 : i32
    %c0_i32_1 = arith.constant 0 : i32
    return %arg0, %c0_i32, %c0_i32_0 : i32, i32, i32
  }
  func.func @transform_3(%arg0: i32) -> (i32, i32) {
    %c0_i32 = arith.constant 0 : i32
    %c0_i32_0 = arith.constant 0 : i32
    return %c0_i32, %arg0 : i32, i32
  }
}

</mosaic_0001>

<bundles_post_ra>
// kernel: tpu_custom_call.1
= control target key start
LH: loop header
LB: loop body
LE: loop exit
PB: predicated region body
PF: predicated region fallthrough
CT: control target
= control target key end

     0   :  { %8 = vsyncpa [#allocation3], 0  ;;  %s313_s0 = inlined_call_operand.hbm [shape: f32[2,16], index: 0, kind: input, shape index: {}]   ;;  %s314_s1 = inlined_call_operand.vmem [shape: f32[2,16], index: 1, kind: input, shape index: {}]   ;;  %s315_s2 = inlined_call_operand.hbm [shape: f32[2,16,16], index: 2, kind: input, shape index: {}]   ;;  %s316_s3 = inlined_call_operand.hbm [shape: f32[1,2], index: 3, kind: output, shape index: {}]  }
   0x1   :  { %9 = vsyncpa [#allocation6], 0 }
   0x2   :  { %10 = vsyncpa [#allocation4], 0  ;;  %s239_s12 = smov [#allocation2]   ;;  %s240_s14 = smov [#allocation5]  }
   0x3   :  { %s17_s13 = sshll.u32 %s239_s12, 4  ;;  %s28_s15 = sshll.u32 %s240_s14, 4  ;;  %s18_s13 = int_to_ptr.vmem [resolvable:$true] %s17_s13  ;;  %s265_s15 = int_to_ptr.vmem [resolvable:$true] %s28_s15 }
   0x4   :  { %s167_s18 = scalar_lea.hbm %s313_s0, 32 }
   0x5   :  { %p168_p0 = scmp.ne.s32.totalorder %s313_s0, %s167_s18  ;;  %p171_p1 = scmp.lt.u32.totalorder %s167_s18, %s313_s0 }
   0x7   :  { %p173_p2 = pnand %p171_p1, %p168_p0 }
   0x9   :  { %176 = shalt.err (!%p173_p2)
}
   0xa   :  { %s177_s23 = scalar_lea.vmem %s18_s13, 32  ;;  %p182_p4 = scmp.lt.s32.totalorder %s18_s13, %s18_s13 }
   0xb   :  { %p178_p3 = scmp.ne.s32.totalorder %s18_s13, %s177_s23  ;;  %p183_p5 = scmp.lt.s32.totalorder %s177_s23, %s177_s23 }
   0xd   :  { %p184_p6 = por %p183_p5, %p182_p4 }
   0xf   :  { %p185_p7 = pnand %p184_p6, %p178_p3 }
  0x11   :  { %188 = shalt.err (!%p185_p7)
}
  0x12   :  { %20 = dma.hbm_to_vmem [thread:$0]  %s313_s0, 32, %s18_s13, [#allocation3]  }
  0x13   :  { %s189_s28 = scalar_lea.hbm %s315_s2, 512 }
  0x14   :  { %p190_p8 = scmp.ne.s32.totalorder %s315_s2, %s189_s28  ;;  %p193_p9 = scmp.lt.u32.totalorder %s189_s28, %s315_s2 }
  0x16   :  { %p195_p10 = pnand %p193_p9, %p190_p8 }
  0x18   :  { %198 = shalt.err (!%p195_p10)
}
  0x19   :  { %s199_s6 = scalar_lea.vmem %s265_s15, 512  ;;  %p204_p12 = scmp.lt.s32.totalorder %s265_s15, %s265_s15 }
  0x1a   :  { %p200_p11 = scmp.ne.s32.totalorder %s265_s15, %s199_s6  ;;  %p205_p13 = scmp.lt.s32.totalorder %s199_s6, %s199_s6 }
  0x1c   :  { %p206_p0 = por %p205_p13, %p204_p12 }
  0x1e   :  { %p207_p1 = pnand %p206_p0, %p200_p11 }
  0x20   :  { %210 = shalt.err (!%p207_p1)
}
  0x21   :  { %s241_s0 = smov 128   ;;  %s242_s7 = smov 8  }
  0x22   :  { %34 = dma.hbm_to_vmem [thread:$0]  %s315_s2, 512, %s265_s15, [#allocation6], %s241_s0, %s241_s0, %s242_s7  }
  0x23   :  { %233 = dma.done.wait [#allocation3], 32  }
  0x24   :  { %234 = vsyncadd [#allocation3], 4294967264 }
  0x25   :  { %235 = dma.done.wait [#allocation6], 512  }
  0x26   :  { %236 = vsyncadd [#allocation6], 4294966784  ;;  %v51_v0 = vlaneseq  ;;  %v243_v1 = vmov 1966171168   ;;  %v41_v8 = vld [vmem:[#allocation2] sm:$0x3] }
  0x27   :  { %v49_v2 = vunpack.c.l.s4 %v243_v1  ;;  %v43_v13 = vld [vmem:[#allocation5] sm:$0xff]  ;;  %v44_v14 = vld [vmem:[#allocation5 + $0x8] sm:$0xff]  ;;  %vm84_vm0 = vcmask 130048   ;;  %v45_v17 = vld [vmem:[#allocation5 + $0x10] sm:$0xff]  ;;  %vm127_vm1 = vcmask 123904   ;;  %vm112_vm2 = vcmask 130112  }
  0x28   :  { %v52_v3 = vshrl.u32 %v51_v0, 7  ;;  %v102_v4 = vand.u32 127, %v51_v0  ;;  %v46_v18 = vld [vmem:[#allocation5 + $0x18] sm:$0xff]  ;;  %vm123_vm3 = vcmask 1041409   ;;  %vm143_vm4 = vcmask 8192  }
  0x29   :  { %v50_v5 = vunpack.c.0.s8 %v49_v2  ;;  %v42_v30 = vld [vmem:[%s314_s1] sm:$0x3]  ;;  %s244_s1 = smov [#allocation7]  }
  0x2a   :  { %v105_v6 = vsub.s32 %v102_v4, %v52_v3  ;;  %v72_v10 = vsub.s32 0, %v52_v3  ;;  %v107_v28 = vadd.s32 4294967288, %v102_v4  ;;  %v131_v31 = vmul.f32 %v42_v30, %v41_v8  ;;  %s151_s11 = sshll.u32 %s244_s1, 4  ;;  %s152_s11 = int_to_ptr.vmem [resolvable:$true] %s151_s11 }
  0x2b   :  { %v53_v7 = vsub.s32 %v50_v5, %v52_v3  ;;  %s211_s12 = scalar_lea.vmem %s152_s11, 16  ;;  %s215_s13 = scalar_lea.vmem %s152_s11, 32 }
  0x2c   :  { %v110_v29 = vsub.s32 %v107_v28, %v52_v3  ;;  %v132_v32 = vsel %vm127_vm1, %v131_v31, 0.0  ;;  %p212_p2 = scmp.ne.s32.totalorder %s152_s11, %s211_s12  ;;  %p216_p3 = scmp.lt.s32.totalorder %s152_s11, %s152_s11 }
  0x2d   :  { %v54_v9 = vrot.slane %v41_v8, %v53_v7  ;;  %p217_p4 = scmp.lt.s32.totalorder %s215_s13, %s211_s12 }
  0x2f   :  { %v62_v11 = vrot.slane %v54_v9, %v53_v7  ;;  %v55_v12 = vcombine.high %v54_v9, %v54_v9  ;;  %p218_p5 = por %p217_p4, %p216_p3 }
  0x31   :  { %v73_v15 = vrot.slane %v62_v11, %v72_v10  ;;  %v69_v16 = vrot.slane %v55_v12, %v53_v7  ;;  %p219_p6 = pnand %p218_p5, %p212_p2 }
  0x33   :  { %v80_v19 = vmul.f32 %v73_v15, %v43_v13  ;;  %v77_v20 = vrot.slane %v69_v16, %v72_v10  ;;  %v81_v21 = vmul.f32 %v73_v15, %v44_v14 }
  0x35   :  { %v85_v22 = vsel %vm84_vm0, %v80_v19, 0.0  ;;  %v82_v23 = vmul.f32 %v77_v20, %v45_v17  ;;  %v83_v24 = vmul.f32 %v77_v20, %v46_v18  ;;  %v88_v26 = vsel %vm84_vm0, %v81_v21, 0.0 }
  0x36   :  { %86 = vadd.xlane.f32.xlu0 %v85_v22 }
  0x37   :  { %v91_v25 = vsel %vm84_vm0, %v82_v23, 0.0  ;;  %v94_v27 = vsel %vm84_vm0, %v83_v24, 0.0 }
  0x38   :  { %92 = vadd.xlane.f32.xlu1 %v91_v25 }
  0x3a   :  { %89 = vadd.xlane.f32.xlu0 %v88_v26 }
  0x3c   :  { %95 = vadd.xlane.f32.xlu1 %v94_v27 }
  0x40   :  { %133 = vadd.xlane.f32.xlu1 %v132_v32 }
  0xc3   :  { %v87_v33 = vpop.xlane.xlu0 %86 }
  0xc4   :  { %v106_v38 = vrot.slane %v87_v33, %v105_v6 }
  0xc5   :  { %v93_v34 = vpop.xlane.xlu1 %92 }
  0xc6   :  { %v117_v39 = vrot.slane %v93_v34, %v105_v6 }
  0xc7   :  { %v90_v35 = vpop.xlane.xlu0 %89 }
  0xc8   :  { %v111_v36 = vrot.slane %v90_v35, %v110_v29 }
  0xc9   :  { %v96_v37 = vpop.xlane.xlu1 %95 }
  0xca   :  { %v121_v40 = vrot.slane %v96_v37, %v110_v29  ;;  %v113_v41 = vsel %vm112_vm2, %v111_v36, %v106_v38 }
  0xcc   :  { %v122_v42 = vsel %vm112_vm2, %v121_v40, %v117_v39 }
  0xcd   :  { %v124_v43 = vsel %vm123_vm3, %v122_v42, %v113_v41  ;;  %v134_v47 = vpop.xlane.xlu1 %133 }
  0xce   :  { %v126_v44 = vmul.f32 %v124_v43, %v41_v8 }
  0xd0   :  { %v128_v45 = vsel %vm127_vm1, %v126_v44, 0.0 }
  0xd1   :  { %129 = vadd.xlane.f32.xlu0 %v128_v45 }
 0x15e   :  { %v130_v46 = vpop.xlane.xlu0 %129 }
 0x15f   :  { %v135_v48 = vmul.f32 0.5, %v130_v46 }
 0x161   :  { %v136_v49 = vadd.f32 %v135_v48, %v134_v47 }
 0x163   :  { %v141_v50 = vrot.slane %v136_v49, %v105_v6 }
 0x165   :  { %144 = vst.msk [vmem:[#allocation7] sm:$0x1] %vm143_vm4, %v141_v50 }
 0x166   :  { %222 = shalt.err (!%p219_p6)
}
 0x167   :  { %s223_s16 = scalar_lea.hbm %s316_s3, 16 }
 0x168   :  { %p224_p7 = scmp.ne.s32.totalorder %s316_s3, %s223_s16  ;;  %p227_p8 = scmp.lt.u32.totalorder %s223_s16, %s316_s3 }
 0x16a   :  { %p229_p9 = pnand %p227_p8, %p224_p7 }
 0x16c   :  { %232 = shalt.err (!%p229_p9)
}
 0x16d   :  { %154 = dma.vmem_to_hbm [thread:$0]  %s152_s11, 16, %s316_s3, [#allocation4]  }
 0x16e   :  { %237 = dma.done.wait [#allocation4], 16  }
 0x16f   :  { %238 = vsyncadd [#allocation4], 4294967280 }
 0x170   :  { %158 = vsyncpa [#allocation3], 1 }
 0x171   :  { %159 = vsyncpa [#allocation6], 1 }
 0x172   :  { %160 = vsyncpa [#allocation4], 1 }

</bundles_post_ra>
